<compile_context>
chip_gen: v6e
topology: v6e:2x2x1
jax: 0.10.0
libtpu: 0.0.40
codegen_flags: <defaults>
</compile_context>

<pallas_src>
import jax
import jax.numpy as jnp
from jax.experimental import pallas as pl
from jax.experimental.pallas import tpu as pltpu


def complex_layernorm_kernel(p_ref, xr_ref, xi_ref, or_ref, oi_ref):
    xr = xr_ref[...]                     # (TM, E) float32 (real part)
    xi = xi_ref[...]                     # (TM, E) float32 (imag part)
    E = xr.shape[-1]
    inv_e = 1.0 / E
    inv_em1 = 1.0 / (E - 1)

    # Pass 1: means (2 lane reductions).
    mean_r = jnp.sum(xr, axis=-1, keepdims=True) * inv_e
    mean_i = jnp.sum(xi, axis=-1, keepdims=True) * inv_e
    xr_c = xr - mean_r
    xi_c = xi - mean_i

    # Pass 2: centered second moments (3 lane reductions).
    # torch.var default is unbiased (E-1); the covariance uses torch.mean (E).
    var_r = jnp.sum(xr_c * xr_c, axis=-1, keepdims=True) * inv_em1
    var_i = jnp.sum(xi_c * xi_c, axis=-1, keepdims=True) * inv_em1
    cov = jnp.sum(xr_c * xi_c, axis=-1, keepdims=True) * inv_e

    # sqrt of the per-row 2x2 covariance matrix [[var_r, cov], [cov, var_i]]:
    #   sqrt(Cov) = [[var_r + s, cov], [cov, var_i + s]] / t
    # and its inverse, using det(sqrt(Cov)) = s:
    #   inv(sqrt(Cov)) = [[var_i + s, -cov], [-cov, var_r + s]] / (t * s)
    s = jnp.sqrt(var_r * var_i - cov * cov)
    t = jnp.sqrt(var_r + var_i + 2.0 * s)
    r = 1.0 / (t * s)                    # (TM, 1) stats only; exact divide
    iA = (var_i + s) * r
    iB = -cov * r
    iD = (var_r + s) * r

    # Whiten first (per-row broadcasts), then apply the per-channel affine
    # sqrt-weight matrix (per-lane broadcasts): out = sqrt(W) @ (inv(sqrtCov) @ x)
    y0 = iA * xr_c + iB * xi_c
    y1 = iB * xr_c + iD * xi_c

    aw = p_ref[0:1, :]                   # (1, E)
    bw = p_ref[1:2, :]
    dw = p_ref[2:3, :]
    br = p_ref[3:4, :]
    bi = p_ref[4:5, :]

    or_ref[...] = (aw * y0 + bw * y1 + br).astype(or_ref.dtype)
    oi_ref[...] = (bw * y0 + dw * y1 + bi).astype(oi_ref.dtype)


def _precompute_affine_params(weights, bias, E):
    """Hoisted per-channel math: 2x2 sqrt of the affine weight matrix + bias."""
    w0 = weights[:, 0, 0].astype(jnp.float32)
    w1 = weights[:, 1, 0].astype(jnp.float32)
    w2 = weights[:, 2, 0].astype(jnp.float32)
    rvw = w0 * w0
    ivw = w1 * w1
    cvw = (jax.nn.sigmoid(w2) - 0.5) * 2.0 * jnp.sqrt(rvw * ivw)
    sw = jnp.sqrt(rvw * ivw - cvw * cvw)
    tw = jnp.sqrt(rvw + ivw + 2.0 * sw)
    aw = (rvw + sw) / tw
    bw = cvw / tw
    dw = (ivw + sw) / tw
    br = jnp.real(bias).reshape(E).astype(jnp.float32)
    bi = jnp.imag(bias).reshape(E).astype(jnp.float32)
    zero = jnp.zeros((E,), jnp.float32)
    return jnp.stack([aw, bw, dw, br, bi, zero, zero, zero])   # (8, E)


def _vmem_capacity_bytes(default=64 << 20):
    """Per-core VMEM capacity; conservative 64 MiB (v7x) fallback."""
    try:
        info = pltpu.get_tpu_info()
        cap = getattr(info, "vmem_capacity_bytes", None)
        if cap:
            return int(cap)
    except Exception:
        pass
    return default


def _choose_row_tile(N, E, target_rows, vmem_budget):
    """Largest row tile that fits the VMEM budget, multiple of 8 (or == N)."""
    per_row = 4 * 2 * E * 4          # xr/xi/out_r/out_i blocks, double-buffered
    tm = min(target_rows, max(8, vmem_budget // per_row))
    tm = max(8, (tm // 8) * 8)
    if tm >= N:
        return N
    # Prefer >=4 grid steps (feeds v7x's 2 TCs + the 2-deep pipeline), but never
    # shrink the tile below ~512 rows: 512+-row tiles sit near the measured HBM
    # roofline sweet spot, smaller tiles cost up to ~1.3x.
    if N >= 4 * 512:
        cap = max(512, ((N // 4) // 8) * 8)
        tm = min(tm, cap)
    return max(8, (tm // 8) * 8)


def complex_layer_norm(x, weights, bias, *, target_rows=2048):
    """x: complex64 [B, S, E]; weights: float32 [E, 3, 1]; bias: complex64 [1, 1, E]."""
    B, S, E = x.shape
    N = B * S

    # TODO(synk): complex64 cannot be bitcast to f32 in JAX, so this split (and
    # the merge below) are each one extra fused HBM pass outside the kernel.
    xr = jnp.real(x).reshape(N, E).astype(jnp.float32)
    xi = jnp.imag(x).reshape(N, E).astype(jnp.float32)
    params = _precompute_affine_params(weights, bias, E)

    vmem_cap = _vmem_capacity_bytes()
    tile_budget = min(24 << 20, max(8 << 20, vmem_cap // 3))
    tm = _choose_row_tile(N, E, target_rows=target_rows, vmem_budget=tile_budget)
    grid = (pl.cdiv(N, tm),)

    # Double-buffered block footprint (4 data blocks + resident params) + headroom.
    blk_bytes = 4 * 2 * tm * E * 4 + 2 * 8 * E * 4
    vmem_limit = int(min(max(blk_bytes + (2 << 20), 8 << 20),
                         min(48 << 20, vmem_cap // 2)))

    o_re, o_im = pl.pallas_call(
        complex_layernorm_kernel,
        out_shape=(jax.ShapeDtypeStruct((N, E), jnp.float32),
                   jax.ShapeDtypeStruct((N, E), jnp.float32)),
        grid_spec=pltpu.PrefetchScalarGridSpec(
            num_scalar_prefetch=0,
            grid=grid,
            in_specs=[pl.BlockSpec((8, E), lambda i: (0, 0)),     # affine params
                      pl.BlockSpec((tm, E), lambda i: (i, 0)),    # x real
                      pl.BlockSpec((tm, E), lambda i: (i, 0))],   # x imag
            out_specs=[pl.BlockSpec((tm, E), lambda i: (i, 0)),
                       pl.BlockSpec((tm, E), lambda i: (i, 0))]),
        compiler_params=pltpu.CompilerParams(
            dimension_semantics=("parallel",),
            vmem_limit_bytes=vmem_limit),
    )(params, xr, xi)

    return (o_re + 1j * o_im).astype(jnp.complex64).reshape(B, S, E)


def complex_layer_norm_ref(x, weights, bias):
    """Pure-JAX reference mirroring the torch forward exactly."""
    E = x.shape[-1]
    xr, xi = jnp.real(x), jnp.imag(x)
    mr = jnp.mean(xr, -1, keepdims=True)
    mi = jnp.mean(xi, -1, keepdims=True)
    xr_c, xi_c = xr - mr, xi - mi
    var_r = jnp.sum(xr_c**2, -1, keepdims=True) / (E - 1)
    var_i = jnp.sum(xi_c**2, -1, keepdims=True) / (E - 1)
    cov = jnp.mean(xr_c * xi_c, -1, keepdims=True)
    s = jnp.sqrt(var_r * var_i - cov**2)
    t = jnp.sqrt(var_r + var_i + 2 * s)
    A, Bm, D = (var_r + s) / t, cov / t, (var_i + s) / t
    det = A * D - Bm * Bm
    iA, iB, iD = D / det, -Bm / det, A / det
    w0 = weights[:, 0, 0]
    w1 = weights[:, 1, 0]
    w2 = weights[:, 2, 0]
    rvw, ivw = w0**2, w1**2
    cvw = (jax.nn.sigmoid(w2) - 0.5) * 2 * jnp.sqrt(rvw * ivw)
    sw = jnp.sqrt(rvw * ivw - cvw**2)
    tw = jnp.sqrt(rvw + ivw + 2 * sw)
    Aw, Bw, Dw = (rvw + sw) / tw, cvw / tw, (ivw + sw) / tw
    M00 = Aw * iA + Bw * iB
    M01 = Aw * iB + Bw * iD
    M10 = Bw * iA + Dw * iB
    M11 = Bw * iB + Dw * iD
    out_r = M00 * xr_c + M01 * xi_c + jnp.real(bias)
    out_i = M10 * xr_c + M11 * xi_c + jnp.imag(bias)
    return (out_r + 1j * out_i).astype(jnp.complex64)


if __name__ == "__main__":
    B, S, E = 2, 24, 128
    key = jax.random.PRNGKey(0)
    k1, k2, k3, k4, k5 = jax.random.split(key, 5)

    x = (jax.random.normal(k1, (B, S, E), jnp.float32)
         + 1j * jax.random.normal(k2, (B, S, E), jnp.float32)).astype(jnp.complex64)

    # Parameters: torch init is [1, 1, 0] per channel and zero bias; add a small
    # deterministic perturbation so the affine path is actually exercised.
    base = jnp.tile(jnp.array([1.0, 1.0, 0.0], jnp.float32), (E, 1))[..., None]   # (E, 3, 1)
    weights = base + 0.1 * jax.random.normal(k3, (E, 3, 1), jnp.float32)
    bias = (0.05 * jax.random.normal(k4, (1, 1, E), jnp.float32)
            + 1j * 0.05 * jax.random.normal(k5, (1, 1, E), jnp.float32)).astype(jnp.complex64)

    # Small target tile so the test exercises a multi-step grid (N=48, tm=16 -> 3 steps).
    out = complex_layer_norm(x, weights, bias, target_rows=16)
    out = jax.block_until_ready(out)

    ref = complex_layer_norm_ref(x, weights, bias)
    assert out.shape == (B, S, E) and out.dtype == jnp.complex64
    assert jnp.allclose(jnp.real(out), jnp.real(ref), atol=1e-4, rtol=1e-4)
    assert jnp.allclose(jnp.imag(out), jnp.imag(ref), atol=1e-4, rtol=1e-4)

    print("KERNEL_OK")
</pallas_src>

<mosaic_0001>
module attributes {stable_mosaic.version = 11 : i64} {
  func.func @complex_layernorm_kernel(%arg0: i32, %arg1: memref<8x128xf32, #tpu.memory_space<vmem>>, %arg2: memref<16x128xf32, #tpu.memory_space<vmem>>, %arg3: memref<16x128xf32, #tpu.memory_space<vmem>>, %arg4: memref<16x128xf32, #tpu.memory_space<vmem>>, %arg5: memref<16x128xf32, #tpu.memory_space<vmem>>) attributes {dimension_semantics = [#tpu.dimension_semantics<parallel>], iteration_bounds = array<i64: 3>, scalar_prefetch = 0 : i64, scratch_operands = 0 : i64, tpu.core_type = #tpu.core_type<tc>, window_params = [{pipeline_mode = #tpu.pipeline_mode<synchronous>, transform_indices = @transform_0, window_bounds = array<i64: 8, 128>}, {transform_indices = @transform_1, window_bounds = array<i64: 16, 128>}, {transform_indices = @transform_2, window_bounds = array<i64: 16, 128>}, {transform_indices = @transform_3, window_bounds = array<i64: 16, 128>}, {transform_indices = @transform_4, window_bounds = array<i64: 16, 128>}]} {
    %c0 = arith.constant 0 : index
    %c0_0 = arith.constant 0 : index
    %0 = vector.load %arg2[%c0, %c0_0] : memref<16x128xf32, #tpu.memory_space<vmem>>, vector<16x128xf32>
    %c0_1 = arith.constant 0 : index
    %c0_2 = arith.constant 0 : index
    %1 = vector.load %arg3[%c0_1, %c0_2] : memref<16x128xf32, #tpu.memory_space<vmem>>, vector<16x128xf32>
    %cst = arith.constant dense<0.000000e+00> : vector<16xf32>
    %2 = vector.multi_reduction <add>, %0, %cst [1] : vector<16x128xf32> to vector<16xf32>
    %3 = vector.shape_cast %2 : vector<16xf32> to vector<16x1xf32>
    %cst_3 = arith.constant 7.812500e-03 : f32
    %4 = vector.broadcast %cst_3 : f32 to vector<16x1xf32>
    %5 = arith.mulf %3, %4 : vector<16x1xf32>
    %cst_4 = arith.constant dense<0.000000e+00> : vector<16xf32>
    %6 = vector.multi_reduction <add>, %1, %cst_4 [1] : vector<16x128xf32> to vector<16xf32>
    %7 = vector.shape_cast %6 : vector<16xf32> to vector<16x1xf32>
    %cst_5 = arith.constant 7.812500e-03 : f32
    %8 = vector.broadcast %cst_5 : f32 to vector<16x1xf32>
    %9 = arith.mulf %7, %8 : vector<16x1xf32>
    %10 = vector.broadcast %5 : vector<16x1xf32> to vector<16x128xf32>
    %11 = arith.subf %0, %10 : vector<16x128xf32>
    %12 = vector.broadcast %9 : vector<16x1xf32> to vector<16x128xf32>
    %13 = arith.subf %1, %12 : vector<16x128xf32>
    %14 = arith.mulf %11, %11 : vector<16x128xf32>
    %cst_6 = arith.constant dense<0.000000e+00> : vector<16xf32>
    %15 = vector.multi_reduction <add>, %14, %cst_6 [1] : vector<16x128xf32> to vector<16xf32>
    %16 = vector.shape_cast %15 : vector<16xf32> to vector<16x1xf32>
    %cst_7 = arith.constant 0.00787401571 : f32
    %17 = vector.broadcast %cst_7 : f32 to vector<16x1xf32>
    %18 = arith.mulf %16, %17 : vector<16x1xf32>
    %19 = arith.mulf %13, %13 : vector<16x128xf32>
    %cst_8 = arith.constant dense<0.000000e+00> : vector<16xf32>
    %20 = vector.multi_reduction <add>, %19, %cst_8 [1] : vector<16x128xf32> to vector<16xf32>
    %21 = vector.shape_cast %20 : vector<16xf32> to vector<16x1xf32>
    %cst_9 = arith.constant 0.00787401571 : f32
    %22 = vector.broadcast %cst_9 : f32 to vector<16x1xf32>
    %23 = arith.mulf %21, %22 : vector<16x1xf32>
    %24 = arith.mulf %11, %13 : vector<16x128xf32>
    %cst_10 = arith.constant dense<0.000000e+00> : vector<16xf32>
    %25 = vector.multi_reduction <add>, %24, %cst_10 [1] : vector<16x128xf32> to vector<16xf32>
    %26 = vector.shape_cast %25 : vector<16xf32> to vector<16x1xf32>
    %cst_11 = arith.constant 7.812500e-03 : f32
    %27 = vector.broadcast %cst_11 : f32 to vector<16x1xf32>
    %28 = arith.mulf %26, %27 : vector<16x1xf32>
    %29 = arith.mulf %18, %23 : vector<16x1xf32>
    %30 = arith.mulf %28, %28 : vector<16x1xf32>
    %31 = arith.subf %29, %30 : vector<16x1xf32>
    %32 = math.sqrt %31 : vector<16x1xf32>
    %33 = arith.addf %18, %23 : vector<16x1xf32>
    %cst_12 = arith.constant 2.000000e+00 : f32
    %34 = vector.broadcast %cst_12 : f32 to vector<16x1xf32>
    %35 = arith.mulf %34, %32 : vector<16x1xf32>
    %36 = arith.addf %33, %35 : vector<16x1xf32>
    %37 = math.sqrt %36 : vector<16x1xf32>
    %38 = arith.mulf %37, %32 : vector<16x1xf32>
    %cst_13 = arith.constant 1.000000e+00 : f32
    %39 = vector.broadcast %cst_13 : f32 to vector<16x1xf32>
    %40 = arith.divf %39, %38 : vector<16x1xf32>
    %41 = arith.addf %23, %32 : vector<16x1xf32>
    %42 = arith.mulf %41, %40 : vector<16x1xf32>
    %cst_14 = arith.constant 0.000000e+00 : f32
    %43 = vector.broadcast %cst_14 : f32 to vector<16x1xf32>
    %44 = arith.subf %43, %28 : vector<16x1xf32>
    %45 = arith.mulf %44, %40 : vector<16x1xf32>
    %46 = arith.addf %18, %32 : vector<16x1xf32>
    %47 = arith.mulf %46, %40 : vector<16x1xf32>
    %48 = vector.broadcast %42 : vector<16x1xf32> to vector<16x128xf32>
    %49 = arith.mulf %48, %11 : vector<16x128xf32>
    %50 = vector.broadcast %45 : vector<16x1xf32> to vector<16x128xf32>
    %51 = arith.mulf %50, %13 : vector<16x128xf32>
    %52 = arith.addf %49, %51 : vector<16x128xf32>
    %53 = vector.broadcast %45 : vector<16x1xf32> to vector<16x128xf32>
    %54 = arith.mulf %53, %11 : vector<16x128xf32>
    %55 = vector.broadcast %47 : vector<16x1xf32> to vector<16x128xf32>
    %56 = arith.mulf %55, %13 : vector<16x128xf32>
    %57 = arith.addf %54, %56 : vector<16x128xf32>
    %c0_15 = arith.constant 0 : index
    %c0_16 = arith.constant 0 : index
    %58 = vector.load %arg1[%c0_15, %c0_16] : memref<8x128xf32, #tpu.memory_space<vmem>>, vector<1x128xf32>
    %c1 = arith.constant 1 : index
    %c0_17 = arith.constant 0 : index
    %59 = vector.load %arg1[%c1, %c0_17] : memref<8x128xf32, #tpu.memory_space<vmem>>, vector<1x128xf32>
    %c2 = arith.constant 2 : index
    %c0_18 = arith.constant 0 : index
    %60 = vector.load %arg1[%c2, %c0_18] : memref<8x128xf32, #tpu.memory_space<vmem>>, vector<1x128xf32>
    %c3 = arith.constant 3 : index
    %c0_19 = arith.constant 0 : index
    %61 = vector.load %arg1[%c3, %c0_19] : memref<8x128xf32, #tpu.memory_space<vmem>>, vector<1x128xf32>
    %c4 = arith.constant 4 : index
    %c0_20 = arith.constant 0 : index
    %62 = vector.load %arg1[%c4, %c0_20] : memref<8x128xf32, #tpu.memory_space<vmem>>, vector<1x128xf32>
    %63 = vector.broadcast %58 : vector<1x128xf32> to vector<16x128xf32>
    %64 = arith.mulf %63, %52 : vector<16x128xf32>
    %65 = vector.broadcast %59 : vector<1x128xf32> to vector<16x128xf32>
    %66 = arith.mulf %65, %57 : vector<16x128xf32>
    %67 = arith.addf %64, %66 : vector<16x128xf32>
    %68 = vector.broadcast %61 : vector<1x128xf32> to vector<16x128xf32>
    %69 = arith.addf %67, %68 : vector<16x128xf32>
    %c0_21 = arith.constant 0 : index
    %c0_22 = arith.constant 0 : index
    %70 = vector.load %arg4[%c0_21, %c0_22] : memref<16x128xf32, #tpu.memory_space<vmem>>, vector<16x128xf32>
    tpu.vector_store %arg4[%c0_21, %c0_22], %69 {strides = array<i32>} : memref<16x128xf32, #tpu.memory_space<vmem>>, vector<16x128xf32>,
    %71 = vector.broadcast %59 : vector<1x128xf32> to vector<16x128xf32>
    %72 = arith.mulf %71, %52 : vector<16x128xf32>
    %73 = vector.broadcast %60 : vector<1x128xf32> to vector<16x128xf32>
    %74 = arith.mulf %73, %57 : vector<16x128xf32>
    %75 = arith.addf %72, %74 : vector<16x128xf32>
    %76 = vector.broadcast %62 : vector<1x128xf32> to vector<16x128xf32>
    %77 = arith.addf %75, %76 : vector<16x128xf32>
    %c0_23 = arith.constant 0 : index
    %c0_24 = arith.constant 0 : index
    %78 = vector.load %arg5[%c0_23, %c0_24] : memref<16x128xf32, #tpu.memory_space<vmem>>, vector<16x128xf32>
    tpu.vector_store %arg5[%c0_23, %c0_24], %77 {strides = array<i32>} : memref<16x128xf32, #tpu.memory_space<vmem>>, vector<16x128xf32>,
    return
  }
  func.func @transform_0(%arg0: i32) -> (i32, i32) {
    %c0_i32 = arith.constant 0 : i32
    %c0_i32_0 = arith.constant 0 : i32
    %c0_i32_1 = arith.constant 0 : i32
    return %c0_i32, %c0_i32_0 : i32, i32
  }
  func.func @transform_1(%arg0: i32) -> (i32, i32) {
    %c0_i32 = arith.constant 0 : i32
    %c0_i32_0 = arith.constant 0 : i32
    return %arg0, %c0_i32 : i32, i32
  }
  func.func @transform_2(%arg0: i32) -> (i32, i32) {
    %c0_i32 = arith.constant 0 : i32
    %c0_i32_0 = arith.constant 0 : i32
    return %arg0, %c0_i32 : i32, i32
  }
  func.func @transform_3(%arg0: i32) -> (i32, i32) {
    %c0_i32 = arith.constant 0 : i32
    %c0_i32_0 = arith.constant 0 : i32
    return %arg0, %c0_i32 : i32, i32
  }
  func.func @transform_4(%arg0: i32) -> (i32, i32) {
    %c0_i32 = arith.constant 0 : i32
    %c0_i32_0 = arith.constant 0 : i32
    return %arg0, %c0_i32 : i32, i32
  }
}

</mosaic_0001>

<bundles_post_ra>
// kernel: tpu_custom_call.1
= control target key start
LH: loop header
LB: loop body
LE: loop exit
PB: predicated region body
PF: predicated region fallthrough
CT: control target
= control target key end

     0   :  { %10 = vsyncpa [#allocation3], 0  ;;  %s1255_s0 = inlined_call_operand.hbm [shape: f32[8,128], index: 0, kind: input, shape index: {}]   ;;  %s1256_s1 = inlined_call_operand.hbm [shape: f32[48,128], index: 1, kind: input, shape index: {}]   ;;  %s1257_s2 = inlined_call_operand.hbm [shape: f32[48,128], index: 2, kind: input, shape index: {}]   ;;  %s1258_s3 = inlined_call_operand.hbm [shape: f32[48,128], index: 3, kind: output, shape index: {0}]   ;;  %s1259_s4 = inlined_call_operand.hbm [shape: f32[48,128], index: 4, kind: output, shape index: {1}]  }
   0x1   :  { %11 = vsyncpa [#allocation6], 0 }
   0x2   :  { %13 = vsyncpa [#allocation6 + $0x1], 0 }
   0x3   :  { %14 = vsyncpa [#allocation4], 0 }
   0x4   :  { %16 = vsyncpa [#allocation4 + $0x1], 0 }
   0x5   :  { %17 = vsyncpa [#allocation10], 0 }
   0x6   :  { %19 = vsyncpa [#allocation10 + $0x1], 0  ;;  %s944_s15 = smov 0   ;;  %s946_s16 = smov 0  }
   0x7   :  { %s948_s17 = smov 0   ;;  %s950_s18 = smov 0  }
   0x8 LB: > { %s965_s19 = sadd.s32 1, %s908_s18   ;;  %s53_s20 = sadd.s32 1, %s904_s17  ;;  %s908_s18 = sphi %s950_s18, %s1278_s18   ;;  %s904_s17 = sphi %s948_s17, %s1277_s17   ;;  %s900_s16 = sphi %s946_s16, %s1276_s16   ;;  %s896_s15 = sphi %s944_s15, %s1275_s15  }
   0x9   : > { %s50_s21 = ssub.s32 %s908_s18, %s965_s19  ;;  %p60_p0 = scmp.ne.s32.totalorder %s904_s17, %s900_s16 }
   0xa   : > { %p51_p1 = scmp.eq.s32.totalorder %s50_s21, 0  ;;  %p61_p2 = scmp.eq.s32.totalorder %s908_s18, 0 }
   0xb   : > { %p676_p3 = scmp.lt.s32.totalorder %s908_s18, 3  ;;  %s179_s23 = sand.u32 1, %s908_s18  }
   0xc   : > { %s975_s22 = scalar_select %p51_p1, %s904_s17, %s53_s20  }
   0xd   : > { %p62_p4 = por %p61_p2, %p60_p0  ;;  %s181_s24 = sand.u32 1, %s904_s17  }
   0xe   : > { %s982_s25 = sshll.u32 %s181_s24, 4  ;;  %s641_s26 = sshll.u32 %s908_s18, 8 }
   0xf   : > { %s990_s29 = scalar_lea.hbm %s1256_s1, %s641_s26  ;;  %s183_s30 = scalar_lea.vmem [#allocation5], %s982_s25 }
  0x10   : > { %s190_s5 = sshll.u32 %s183_s30, 4  ;;  %p993_p5 = pnand %p676_p3, %p62_p4  ;;  %s997_s5 = int_to_ptr.vmem [resolvable:$true] %s190_s5 }
  0x11   : > { %s999_s7 = scalar_lea.sflag [#allocation6], %s179_s23  ;;  %s728_s8 = scalar_lea.hbm %s990_s29, 256 }
  0x12   : > { %p729_p6 = scmp.ne.s32.totalorder %s990_s29, %s728_s8  ;;  %p730_p7 = pneg %p993_p5 }
  0x13   : > { %s733_s11 = scalar_lea.hbm %s1256_s1, 768  ;;  %p734_p10 = scmp.lt.s32.totalorder %s990_s29, %s1256_s1 }
  0x14   : > { %p731_p8 = pnand %p730_p7, %p729_p6  ;;  %p735_p11 = scmp.lt.s32.totalorder %s733_s11, %s728_s8 }
  0x16   : > { %p732_p9 = pneg %p731_p8  ;;  %p736_p12 = por %p735_p11, %p734_p10 }
  0x18   : > { %p737_p13 = pnand %p736_p12, %p732_p9 }
  0x1a   : > { %740 = shalt.err (!%p737_p13)
}
  0x1b   : > { %s741_s14 = scalar_lea.vmem %s997_s5, 256  ;;  %s910_s20 = smov [#allocation5]  }
  0x1c   : > { %p742_p1 = scmp.ne.s32.totalorder %s997_s5, %s741_s14  ;;  %s746_s21 = sshll.u32 %s910_s20, 4  ;;  %s747_s21 = int_to_ptr.vmem [resolvable:$false] %s746_s21 }
  0x1d   : > { %s748_s23 = scalar_lea.vmem %s747_s21, 512  ;;  %p749_p4 = scmp.lt.s32.totalorder %s997_s5, %s747_s21 }
  0x1e   : > { %p744_p2 = pnand %p742_p1, %p730_p7  ;;  %p750_p6 = scmp.lt.s32.totalorder %s748_s23, %s741_s14 }
  0x20   : > { %p745_p3 = pneg %p744_p2  ;;  %p751_p8 = por %p750_p6, %p749_p4 }
  0x22   : > { %p752_p10 = pnand %p751_p8, %p745_p3 }
  0x24   : > { %755 = shalt.err (!%p752_p10)
}
  0x25   : > { %s911_s24 = smov 128   ;;  %s912_s27 = smov 8  }
  0x26   : > { %664 = dma.hbm_to_vmem [thread:$0]  (!%p993_p5), %s990_s29, 256, %s997_s5, %s999_s7, %s911_s24, %s911_s24, %s912_s27  }
  0x27   : > { %s204_s28 = scalar_lea.vmem [#allocation7], %s982_s25  ;;  %s1031_s8 = sadd.s32 4294967295, %s908_s18  }
  0x28   : > { %s211_s30 = sshll.u32 %s204_s28, 4  ;;  %s612_s9 = sadd.s32 4294967294, %s908_s18   ;;  %s1064_s30 = int_to_ptr.vmem [resolvable:$true] %s211_s30 }
  0x29   : > { %p66_p9 = scmp.ne.s32.totalorder %s900_s16, %s896_s15  ;;  %p1260_p11 = scmp.eq.s32.totalorder %s1031_s8, 0 }
  0x2a   : > { %p116_p12 = scmp.eq.s32.totalorder %s1031_s8, 2  ;;  %p122_p13 = scmp.eq.s32.totalorder %s612_s9, 2 }
  0x2b   : > { %p1040_p1 = por %p1260_p11, %p66_p9  ;;  %p613_p2 = scmp.ge.s32.totalorder %s908_s18, 1 }
  0x2c   : > { %p1048_p3 = por %p116_p12, %p60_p0  ;;  %p1052_p4 = por %p122_p13, %p66_p9 }
  0x2d   : > { %s1264_s10 = scalar_select %p1040_p1, 1, 0 }
  0x2e   : > { %s1265_s25 = scalar_select %p1048_p3, 1, 0 }
  0x2f   : > { %s1266_s29 = scalar_select %p1052_p4, 1, 0 }
  0x30   : > { %p155_p6 = scmp.lt.s32.totalorder %s908_s18, 4  ;;  %s1062_s12 = scalar_lea.hbm %s1257_s2, %s641_s26 }
  0x31   : > { %s913_s14 = smov [#allocation2]   ;;  %s756_s21 = scalar_lea.hbm %s1062_s12, 256 }
  0x32   : > { %p1066_p0 = pnand %p613_p2, %p155_p6  ;;  %s1070_s20 = sshll.u32 %s913_s14, 4  ;;  %s169_s20 = int_to_ptr.vmem [resolvable:$true] %s1070_s20 }
  0x33   : > { %p757_p10 = scmp.ne.s32.totalorder %s1062_s12, %s756_s21  ;;  %s761_s28 = scalar_lea.hbm %s1257_s2, 768 }
  0x34   : > { %p762_p13 = scmp.lt.s32.totalorder %s1062_s12, %s1257_s2  ;;  %p763_p2 = scmp.lt.s32.totalorder %s761_s28, %s756_s21 }
  0x35   : > { %p759_p9 = pnand %p757_p10, %p730_p7 }
  0x36   : > { %p764_p6 = por %p763_p2, %p762_p13 }
  0x37   : > { %p760_p12 = pneg %p759_p9 }
  0x39   : > { %p765_p11 = pnand %p764_p6, %p760_p12 }
  0x3b   : > { %768 = shalt.err (!%p765_p11)
}
  0x3c   : > { %s769_s11 = scalar_lea.vmem %s1064_s30, 256  ;;  %s914_s14 = smov [#allocation7]  }
  0x3d   : > { %p770_p8 = scmp.ne.s32.totalorder %s1064_s30, %s769_s11  ;;  %s774_s26 = sshll.u32 %s914_s14, 4  ;;  %s775_s26 = int_to_ptr.vmem [resolvable:$false] %s774_s26 }
  0x3e   : > { %s776_s23 = scalar_lea.vmem %s775_s26, 512  ;;  %p777_p4 = scmp.lt.s32.totalorder %s1064_s30, %s775_s26 }
  0x3f   : > { %p772_p10 = pnand %p770_p8, %p730_p7  ;;  %p778_p3 = scmp.lt.s32.totalorder %s776_s23, %s769_s11 }
  0x41   : > { %p773_p9 = pneg %p772_p10  ;;  %p779_p1 = por %p778_p3, %p777_p4 }
  0x43   : > { %p780_p13 = pnand %p779_p1, %p773_p9 }
  0x45   : > { %783 = shalt.err (!%p780_p13)
}
  0x46   : > { %667 = dma.hbm_to_vmem [thread:$0]  (!%p993_p5), %s1062_s12, 256, %s1064_s30, %s999_s7, %s911_s24, %s911_s24, %s912_s27  }
  0x47   : > { %p1268_p7 = scmp.eq.s32.totalorder %s1031_s8, 0  ;;  %p1269_p11 = pneg %p1066_p0 }
  0x48   : > { %s795_s21 = scalar_lea.vmem %s169_s20, 128  ;;  %p803_p2 = scmp.lt.s32.totalorder %s169_s20, %s169_s20 }
  0x49   : > { %p658_p8 = pnand %p1269_p11, %p1268_p7  ;;  %p796_p1 = scmp.ne.s32.totalorder %s169_s20, %s795_s21 }
  0x4a   : > { %p804_p6 = scmp.lt.s32.totalorder %s795_s21, %s795_s21 }
  0x4b   : > { %p786_p3 = pneg %p658_p8 }
  0x4c   : > { %p805_p10 = por %p804_p6, %p803_p2 }
  0x4d   : > { %p798_p4 = pnand %p796_p1, %p786_p3 }
  0x4f   : > { %p799_p12 = pneg %p798_p4 }
  0x51   : > { %p806_p9 = pnand %p805_p10, %p799_p12 }
  0x53   : > { %809 = shalt.err (!%p806_p9)
}
  0x54   : > { %660 = dma.hbm_to_vmem [thread:$0]  (!%p658_p8), %s1255_s0, 128, %s169_s20, [#allocation3]  }
  0x55   : > { %223 = sbr.rel (%p1066_p0) target bundleno = 502 (0x1f6), region = 32  ;;  %p1270_p5 = scmp.eq.s32.totalorder (!%p1066_p0), %s1031_s8, 0 }
  0x5a   : > { %879 = dma.done.wait (%p1270_p5), [#allocation3], 128   ;;  %p1271_p13 = pmov %p1270_p5 }
  0x5b   : > { %s229_s7 = sand.u32 1, %s1031_s8   ;;  %s1117_s24 = sand.u32 1, %s900_s16  }
  0x5c   : > { %881 = vsyncadd (%p1271_p13), [#allocation3], 4294967168  ;;  %s1120_s27 = sshll.u32 %s1117_s24, 4  ;;  %s230_s30 = scalar_lea.sflag [#allocation6], %s229_s7 }
  0x5d   : > { %s233_s12 = scalar_lea.vmem [#allocation5], %s1120_s27  ;;  %p1272_p7 = scmp.ne.s32.totalorder %s1264_s10, 0 }
  0x5f   : > { %883 = dma.done.wait (%p1272_p7), %s230_s30, 512  }
  0x60   : > { %885 = vsyncadd (%p1272_p7), %s230_s30, 4294966784  ;;  %s242_s13 = scalar_lea.vmem [#allocation7], %s1120_s27  ;;  %v281_v1 = vld [vmem:[%s233_s12] sm:$0xff]  ;;  %v282_v3 = vld [vmem:[%s233_s12 + $0x8] sm:$0xff]  ;;  %s269_s10 = scalar_lea.vmem [#allocation8], %s1120_s27 }
  0x61   : > { %v283_v0 = vld [vmem:[%s242_s13] sm:$0xff]  ;;  %285 = vadd.xlane.f32.xlu0 %v281_v1  ;;  %v284_v2 = vld [vmem:[%s242_s13 + $0x8] sm:$0xff]  ;;  %s643_s20 = sshll.u32 %s1031_s8, 8  ;;  %s276_s9 = scalar_lea.vmem [#allocation9], %s1120_s27 }
  0x62   : > { %291 = vadd.xlane.f32.xlu1 %v283_v0  ;;  %s459_s5 = sshll.u32 %s269_s10, 4  ;;  %s1177_s26 = scalar_lea.hbm %s1258_s3, %s643_s20  ;;  %s1179_s5 = int_to_ptr.vmem [resolvable:$true] %s459_s5 }
  0x63   : > { %s475_s23 = sshll.u32 %s276_s9, 4  ;;  %s1184_s6 = scalar_lea.hbm %s1259_s4, %s643_s20  ;;  %s1186_s23 = int_to_ptr.vmem [resolvable:$true] %s475_s23 }
  0x64   : > { %s441_s28 = scalar_lea.sflag [#allocation4], %s1117_s24  ;;  %s810_s7 = scalar_lea.vmem %s1179_s5, 256 }
  0x65   : > { %287 = vadd.xlane.f32.xlu0 %v282_v3  ;;  %p811_p0 = scmp.ne.s32.totalorder %s1179_s5, %s810_s7  ;;  %p1273_p11 = scmp.ne.s32.totalorder %s1265_s25, 0 }
  0x66   : > { %293 = vadd.xlane.f32.xlu1 %v284_v2  ;;  %s915_s27 = smov [#allocation8]  }
  0x67   : > { %p812_p8 = pnand %p811_p0, %p1273_p11  ;;  %s814_s30 = sshll.u32 %s915_s27, 4  ;;  %s815_s30 = int_to_ptr.vmem [resolvable:$false] %s814_s30 }
  0x68   : > { %s816_s12 = scalar_lea.vmem %s815_s30, 512  ;;  %p817_p1 = scmp.lt.s32.totalorder %s1179_s5, %s815_s30 }
  0x69   : > { %p813_p3 = pneg %p812_p8  ;;  %p818_p4 = scmp.lt.s32.totalorder %s816_s12, %s810_s7 }
  0x6b   : > { %p819_p12 = por %p818_p4, %p817_p1 }
  0x6d   : > { %p820_p2 = pnand %p819_p12, %p813_p3 }
  0xea   : > { %v286_v5 = vpop.xlane.xlu0 %285 }
  0xeb   : > { %v292_v4 = vpop.xlane.xlu1 %291  ;;  %v289_v7 = vmul.f32 0.0078125, %v286_v5 }
  0xec   : > { %v295_v6 = vmul.f32 0.0078125, %v292_v4 }
  0xed   : > { %v1128_v8 = vsub.f32 %v281_v1, %v289_v7 }
  0xee   : > { %v288_v10 = vpop.xlane.xlu0 %287  ;;  %v1130_v11 = vsub.f32 %v283_v0, %v295_v6 }
  0xef   : > { %v294_v9 = vpop.xlane.xlu1 %293  ;;  %v290_v13 = vmul.f32 0.0078125, %v288_v10  ;;  %v301_v14 = vmul.f32 %v1128_v8, %v1128_v8 }
  0xf0   : > { %v296_v12 = vmul.f32 0.0078125, %v294_v9  ;;  %v309_v16 = vmul.f32 %v1130_v11, %v1130_v11  ;;  %v317_v20 = vmul.f32 %v1130_v11, %v1128_v8 }
  0xf1   : > { %v1134_v15 = vsub.f32 %v282_v3, %v290_v13  ;;  %303 = vadd.xlane.f32.xlu0 %v301_v14 }
  0xf2   : > { %v1138_v17 = vsub.f32 %v284_v2, %v296_v12 }
  0xf3   : > { %v302_v18 = vmul.f32 %v1134_v15, %v1134_v15 }
  0xf4   : > { %v310_v19 = vmul.f32 %v1138_v17, %v1138_v17  ;;  %v318_v21 = vmul.f32 %v1138_v17, %v1134_v15 }
  0xf5   : > { %311 = vadd.xlane.f32.xlu0 %v309_v16  ;;  %305 = vadd.xlane.f32.xlu1 %v302_v18 }
  0xf9   : > { %319 = vadd.xlane.f32.xlu0 %v317_v20  ;;  %313 = vadd.xlane.f32.xlu1 %v310_v19  ;;  %v628_v19 = vld [vmem:[#allocation2] ss:$0 sm:$0xff]  ;;  %v629_v20 = vld [vmem:[#allocation2 + $0x1] ss:$0 sm:$0xff] }
  0xfd   : > { %321 = vadd.xlane.f32.xlu1 %v318_v21  ;;  %v631_v21 = vld [vmem:[#allocation2 + $0x2] ss:$0 sm:$0xff] }
 0x17a   : > { %v304_v22 = vpop.xlane.xlu0 %303 }
 0x17b   : > { %v307_v28 = vmul.f32 0.007874016, %v304_v22 }
 0x17e   : > { %v306_v23 = vpop.xlane.xlu1 %305  ;;  %v312_v24 = vpop.xlane.xlu0 %311 }
 0x17f   : > { %v315_v25 = vmul.f32 0.007874016, %v312_v24  ;;  %v1152_v36 = vmul.f32 0.007874016, %v306_v23 }
 0x181   : > { %v325_v30 = vmul.f32 %v315_v25, %v307_v28  ;;  %v345_v46 = vadd.f32 %v315_v25, %v307_v28 }
 0x182   : > { %v314_v26 = vpop.xlane.xlu1 %313  ;;  %v320_v27 = vpop.xlane.xlu0 %319 }
 0x183   : > { %v323_v29 = vmul.f32 0.0078125, %v320_v27  ;;  %v1148_v32 = vmul.f32 0.007874016, %v314_v26 }
 0x185   : > { %v327_v31 = vmul.f32 %v323_v29, %v323_v29  ;;  %v326_v37 = vmul.f32 %v1148_v32, %v1152_v36  ;;  %v346_v53 = vadd.f32 %v1148_v32, %v1152_v36  ;;  %v375_v5 = vsub.f32 0.0, %v323_v29 }
 0x186   : > { %v322_v33 = vpop.xlane.xlu1 %321 }
 0x187   : > { %v329_v34 = vsub.f32 %v325_v30, %v327_v31  ;;  %v1150_v35 = vmul.f32 0.0078125, %v322_v33  ;;  %v632_v33 = vld [vmem:[#allocation2 + $0x4] ss:$0 sm:$0xff] }
 0x189   : > { %716 = vrsqrt.f32 %v329_v34  ;;  %v328_v38 = vmul.f32 %v1150_v35, %v1150_v35  ;;  %vm333_vm0 = vcmp.eq.f32.partialorder %v329_v34, inf  ;;  %v336_v42 = vand.u32 2147483648, %v329_v34 }
 0x18a   : > { %vm335_vm1 = vcmp.eq.f32.partialorder %v329_v34, 0.0  ;;  %v376_v26 = vsub.f32 0.0, %v1150_v35 }
 0x18b   : > { %v330_v39 = vsub.f32 %v326_v37, %v328_v38 }
 0x18d   : > { %718 = vrsqrt.f32 %v330_v39  ;;  %vm340_vm2 = vcmp.eq.f32.partialorder %v330_v39, inf  ;;  %v343_v51 = vand.u32 2147483648, %v330_v39  ;;  %vm342_vm3 = vcmp.eq.f32.partialorder %v330_v39, 0.0 }
 0x196   : > { %v717_v40 = vpop.eup %716 }
 0x197   : > { %v332_v41 = vmul.f32 %v717_v40, %v329_v34 }
 0x199   : > { %v334_v43 = vsel %vm333_vm0, %v329_v34, %v332_v41 }
 0x19a   : > { %v337_v44 = vsel %vm335_vm1, %v336_v42, %v334_v43  ;;  %v719_v45 = vpop.eup %718 }
 0x19b   : > { %v347_v47 = vmul.f32 2.0, %v337_v44  ;;  %v339_v48 = vmul.f32 %v719_v45, %v330_v39  ;;  %v371_v4 = vadd.f32 %v337_v44, %v315_v25  ;;  %v379_v6 = vadd.f32 %v337_v44, %v307_v28 }
 0x19d   : > { %v349_v49 = vadd.f32 %v347_v47, %v345_v46  ;;  %v341_v50 = vsel %vm340_vm2, %v330_v39, %v339_v48 }
 0x19e   : > { %v344_v52 = vsel %vm342_vm3, %v343_v51, %v341_v50 }
 0x19f   : > { %720 = vrsqrt.f32 %v349_v49  ;;  %v348_v54 = vmul.f32 2.0, %v344_v52  ;;  %vm353_vm4 = vcmp.eq.f32.partialorder %v349_v49, inf  ;;  %v356_v58 = vand.u32 2147483648, %v349_v49 }
 0x1a0   : > { %vm355_vm5 = vcmp.eq.f32.partialorder %v349_v49, 0.0  ;;  %v372_v25 = vadd.f32 %v344_v52, %v1148_v32  ;;  %v380_v27 = vadd.f32 %v344_v52, %v1152_v36 }
 0x1a1   : > { %v350_v55 = vadd.f32 %v348_v54, %v346_v53 }
 0x1a3   : > { %722 = vrsqrt.f32 %v350_v55  ;;  %vm360_vm6 = vcmp.eq.f32.partialorder %v350_v55, inf  ;;  %v363_v0 = vand.u32 2147483648, %v350_v55  ;;  %vm362_vm7 = vcmp.eq.f32.partialorder %v350_v55, 0.0 }
 0x1ac   : > { %v721_v56 = vpop.eup %720 }
 0x1ad   : > { %v352_v57 = vmul.f32 %v721_v56, %v349_v49 }
 0x1af   : > { %v354_v59 = vsel %vm353_vm4, %v349_v49, %v352_v57 }
 0x1b0   : > { %v357_v60 = vsel %vm355_vm5, %v356_v58, %v354_v59  ;;  %v723_v62 = vpop.eup %722 }
 0x1b1   : > { %v365_v61 = vmul.f32 %v357_v60, %v337_v44  ;;  %v359_v63 = vmul.f32 %v723_v62, %v350_v55 }
 0x1b3   : > { %724 = vrcp.f32 %v365_v61  ;;  %v361_v1 = vsel %vm360_vm6, %v350_v55, %v359_v63 }
 0x1b4   : > { %v364_v2 = vsel %vm362_vm7, %v363_v0, %v361_v1 }
 0x1b5   : > { %v366_v3 = vmul.f32 %v364_v2, %v344_v52 }
 0x1b7   : > { %726 = vrcp.f32 %v366_v3 }
 0x1c0   : > { %v725_v7 = vpop.eup %724 }
 0x1c1   : > { %v373_v9 = vmul.f32 %v725_v7, %v371_v4  ;;  %v377_v10 = vmul.f32 %v725_v7, %v375_v5  ;;  %v381_v12 = vmul.f32 %v725_v7, %v379_v6 }
 0x1c3   : > { %v383_v13 = vmul.f32 %v373_v9, %v1128_v8  ;;  %v385_v14 = vmul.f32 %v377_v10, %v1130_v11  ;;  %v389_v16 = vmul.f32 %v377_v10, %v1128_v8  ;;  %v391_v18 = vmul.f32 %v381_v12, %v1130_v11  ;;  %v630_v8 = vld [vmem:[#allocation2 + $0x3] ss:$0 sm:$0xff] }
 0x1c4   : > { %v727_v24 = vpop.eup %726 }
 0x1c5   : > { %v387_v22 = vadd.f32 %v385_v14, %v383_v13  ;;  %v393_v23 = vadd.f32 %v391_v18, %v389_v16  ;;  %v374_v11 = vmul.f32 %v727_v24, %v372_v25  ;;  %v378_v34 = vmul.f32 %v727_v24, %v376_v26 }
 0x1c6   : > { %v382_v37 = vmul.f32 %v727_v24, %v380_v27 }
 0x1c7   : > { %v404_v28 = vmul.f32 %v628_v19, %v387_v22  ;;  %v410_v29 = vmul.f32 %v629_v20, %v393_v23  ;;  %v422_v30 = vmul.f32 %v629_v20, %v387_v22  ;;  %v428_v31 = vmul.f32 %v631_v21, %v393_v23 }
 0x1c8   : > { %v384_v32 = vmul.f32 %v374_v11, %v1134_v15  ;;  %v386_v35 = vmul.f32 %v378_v34, %v1138_v17  ;;  %v390_v36 = vmul.f32 %v378_v34, %v1134_v15  ;;  %v392_v40 = vmul.f32 %v382_v37, %v1138_v17 }
 0x1c9   : > { %v412_v38 = vadd.f32 %v410_v29, %v404_v28  ;;  %v430_v39 = vadd.f32 %v428_v31, %v422_v30 }
 0x1ca   : > { %v388_v43 = vadd.f32 %v386_v35, %v384_v32  ;;  %v394_v44 = vadd.f32 %v392_v40, %v390_v36 }
 0x1cb   : > { %v418_v41 = vadd.f32 %v630_v8, %v412_v38  ;;  %v436_v42 = vadd.f32 %v632_v33, %v430_v39 }
 0x1cc   : > { %v405_v45 = vmul.f32 %v628_v19, %v388_v43  ;;  %v411_v46 = vmul.f32 %v629_v20, %v394_v44  ;;  %v423_v47 = vmul.f32 %v629_v20, %v388_v43  ;;  %v429_v48 = vmul.f32 %v631_v21, %v394_v44 }
 0x1cd   : > { %420 = vst [vmem:[%s269_s10] sm:$0xff] %v418_v41  ;;  %438 = vst [vmem:[%s276_s9] sm:$0xff] %v436_v42 }
 0x1ce   : > { %v413_v49 = vadd.f32 %v411_v46, %v405_v45  ;;  %v431_v15 = vadd.f32 %v429_v48, %v423_v47 }
 0x1d0   : > { %v419_v17 = vadd.f32 %v630_v8, %v413_v49  ;;  %v437_v50 = vadd.f32 %v632_v33, %v431_v15 }
 0x1d2   : > { %421 = vst [vmem:[%s269_s10 + $0x8] sm:$0xff] %v419_v17  ;;  %439 = vst [vmem:[%s276_s9 + $0x8] sm:$0xff] %v437_v50 }
 0x1d3   : > { %823 = shalt.err (!%p820_p2)
}
 0x1d4   : > { %s824_s13 = scalar_lea.hbm %s1177_s26, 256  ;;  %s828_s9 = scalar_lea.hbm %s1258_s3, 768 }
 0x1d5   : > { %p825_p6 = scmp.ne.s32.totalorder %s1177_s26, %s824_s13  ;;  %p829_p5 = scmp.lt.s32.totalorder %s1177_s26, %s1258_s3 }
 0x1d6   : > { %p830_p13 = scmp.lt.s32.totalorder %s828_s9, %s824_s13 }
 0x1d7   : > { %p826_p10 = pnand %p825_p6, %p1273_p11 }
 0x1d8   : > { %p831_p7 = por %p830_p13, %p829_p5 }
 0x1d9   : > { %p827_p9 = pneg %p826_p10 }
 0x1db   : > { %p832_p0 = pnand %p831_p7, %p827_p9 }
 0x1dd   : > { %835 = shalt.err (!%p832_p0)
}
 0x1de   : > { %s916_s8 = smov 128   ;;  %s917_s21 = smov 8  }
 0x1df   : > { %653 = dma.vmem_to_hbm [thread:$0]  (%p1273_p11), %s1179_s5, 256, %s1177_s26, %s441_s28, %s916_s8, %s916_s8, %s917_s21  }
 0x1e0   : > { %s446_s7 = scalar_lea.sflag [#allocation10], %s1117_s24  ;;  %s836_s27 = scalar_lea.vmem %s1186_s23, 256 }
 0x1e1   : > { %p837_p8 = scmp.ne.s32.totalorder %s1186_s23, %s836_s27  ;;  %s918_s30 = smov [#allocation9]  }
 0x1e2   : > { %s840_s12 = sshll.u32 %s918_s30, 4  ;;  %s841_s12 = int_to_ptr.vmem [resolvable:$false] %s840_s12 }
 0x1e3   : > { %p838_p3 = pnand %p837_p8, %p1273_p11  ;;  %s842_s13 = scalar_lea.vmem %s841_s12, 512 }
 0x1e4   : > { %p843_p4 = scmp.lt.s32.totalorder %s1186_s23, %s841_s12  ;;  %p844_p12 = scmp.lt.s32.totalorder %s842_s13, %s836_s27 }
 0x1e5   : > { %p839_p1 = pneg %p838_p3 }
 0x1e6   : > { %p845_p2 = por %p844_p12, %p843_p4 }
 0x1e8   : > { %p846_p6 = pnand %p845_p2, %p839_p1 }
 0x1ea   : > { %849 = shalt.err (!%p846_p6)
}
 0x1eb   : > { %s850_s5 = scalar_lea.hbm %s1184_s6, 256  ;;  %s854_s28 = scalar_lea.hbm %s1259_s4, 768 }
 0x1ec   : > { %p851_p10 = scmp.ne.s32.totalorder %s1184_s6, %s850_s5  ;;  %p855_p13 = scmp.lt.s32.totalorder %s1184_s6, %s1259_s4 }
 0x1ed   : > { %p856_p7 = scmp.lt.s32.totalorder %s854_s28, %s850_s5 }
 0x1ee   : > { %p852_p9 = pnand %p851_p10, %p1273_p11 }
 0x1ef   : > { %p857_p0 = por %p856_p7, %p855_p13 }
 0x1f0   : > { %p853_p5 = pneg %p852_p9 }
 0x1f2   : > { %p858_p8 = pnand %p857_p0, %p853_p5 }
 0x1f4   : > { %861 = shalt.err (!%p858_p8)
}
 0x1f5   : > { %654 = dma.vmem_to_hbm [thread:$0]  (%p1273_p11), %s1186_s23, 256, %s1184_s6, %s446_s7, %s916_s8, %s916_s8, %s917_s21  }
 0x1f6 PF: > { %p678_p3 = scmp.ge.s32.totalorder %s908_s18, 2  ;;  %s490_s9 = sand.u32 1, %s896_s15  }
 0x1f7   : > { %p1274_p1 = scmp.ne.s32.totalorder %s1266_s29, 0  ;;  %s491_s11 = scalar_lea.sflag [#allocation4], %s490_s9 }
 0x1f9   : > { %p669_p4 = pnand %p678_p3, %p1274_p1 }
 0x1fb   : > { %p670_p12 = pneg %p669_p4 }
 0x1fd   : > { %887 = dma.done.wait (%p670_p12), %s491_s11, 256  }
 0x1fe   : > { %889 = vsyncadd (%p670_p12), %s491_s11, 4294967040  ;;  %s500_s14 = scalar_lea.sflag [#allocation10], %s490_s9 }
 0x1ff   : > { %891 = dma.done.wait (%p670_p12), %s500_s14, 256  }
 0x200   : > { %893 = vsyncadd (%p670_p12), %s500_s14, 4294967040  ;;  %p22_p11 = scmp.ge.s32.totalorder %s965_s19, 5   ;;  %s1275_s15 = smov %s900_s16 }
 0x201   : > { %s1276_s16 = smov %s904_s17  ;;  %s1277_s17 = smov %s975_s22 }
 0x202   : > { %s1278_s18 = smov %s965_s19  ;;  %24 = sbr.rel (!%p22_p11) target bundleno = 8 (0x8), region = 110 }
 0x207   :  { %505 = vsyncpa [#allocation3], 1 }
 0x208   :  { %507 = vsyncpa [#allocation3 + $0x1], 1 }
 0x209   :  { %508 = vsyncpa [#allocation6], 1 }
 0x20a   :  { %510 = vsyncpa [#allocation6 + $0x1], 1 }
 0x20b   :  { %511 = vsyncpa [#allocation4], 1 }
 0x20c   :  { %513 = vsyncpa [#allocation4 + $0x1], 1 }
 0x20d   :  { %514 = vsyncpa [#allocation10], 1 }
 0x20e   :  { %516 = vsyncpa [#allocation10 + $0x1], 1 }

</bundles_post_ra>
